<compile_context>
chip_gen: v7x
topology: tpu7x:2x2x1
jax: 0.10.0
libtpu: 0.0.40
codegen_flags: <defaults>
</compile_context>

<pallas_src>
import functools

import jax
import jax.numpy as jnp
import numpy as np
from jax.experimental import pallas as pl
from jax.experimental.pallas import tpu as pltpu

# ----------------------------------------------------------------------------
# Static "cfg" + constructor args (deterministic, synthetic)
# ----------------------------------------------------------------------------
BASE_CLASSES = list(range(8))                        # 8 base classes
SAME_CLASSES = [[0, 1], [2, 3, 4], [5], [6, 7, 99]]  # 99 not a base class -> dropped
WEIGHTS = [1.0, 0.5, 2.0, 1.5]                       # one weight per same-id group
MEAN_STD = 1.0


def build_same_ids(base_classes, same_classes):
    same_ids = []
    for line in same_classes:
        n = [base_classes.index(j) for j in line if j in base_classes]
        if n:
            same_ids.append(n)
    return same_ids


SAME_IDS = build_same_ids(BASE_CLASSES, SAME_CLASSES)

_SUBLANES = 8  # f32 sublane count; tiles are kept a multiple of 16 rows anyway


# ----------------------------------------------------------------------------
# Pallas kernel: streaming batch partial-sum (the only HBM-heavy work)
# ----------------------------------------------------------------------------
def kl_partial_sum_kernel(x_ref, psum_ref):
    # x_ref:    (tb, D) tile of the lane-dense input (D = n_base * channels)
    # psum_ref: (1, 8, D) f32 per-split partial sum, resident across the
    #           "arbitrary" batch-tile axis (accumulator pattern).
    @pl.when(pl.program_id(1) == 0)
    def _init():
        psum_ref[...] = jnp.zeros_like(psum_ref)

    x = x_ref[...].astype(jnp.float32)                 # cast after the VMEM load
    tb, d = x.shape
    # Reduce only over the vreg-stacking axis (pure VALU adds, no per-step
    # cross-sublane XLU work); the 8 sublanes collapse once in the epilogue.
    psum_ref[...] += jnp.sum(x.reshape(tb // _SUBLANES, _SUBLANES, d), axis=0)[None]


# ----------------------------------------------------------------------------
# Hardware-aware sizing helpers
# ----------------------------------------------------------------------------
def _vmem_capacity_bytes():
    try:
        return int(pltpu.get_tpu_info().vmem_capacity_bytes)
    except Exception:
        return 64 * 1024 * 1024          # conservative (v7x-sized) fallback


def _num_parallel_splits():
    # v7x has 2 TensorCores per chip; shard the batch reduction across them.
    # (Harmless on 1-TC chips: the axis just serializes.)
    try:
        kind = jax.devices()[0].device_kind.lower()
    except Exception:
        return 1
    return 2 if "7" in kind else 1


def _pick_batch_tile(d, itemsize, vmem_bytes):
    """Largest batch-tile (rows) whose double-buffered, lane-padded VMEM
    footprint stays within ~3/8 of this generation's VMEM capacity."""
    lane_pad = ((d + 127) // 128) * 128          # Mosaic pads lanes to 128
    row_bytes = max(lane_pad * itemsize, 1)
    per_buffer_budget = (vmem_bytes * 3) // 8 // 2   # /2: double-buffered input
    tb = (per_buffer_budget // row_bytes) // 16 * 16
    return int(max(tb, 16))


# ----------------------------------------------------------------------------
# Tiny epilogue: group statistics + pairwise loss (plain jitted JAX)
# ----------------------------------------------------------------------------
@functools.partial(jax.jit, static_argnums=(1, 2, 3, 4, 5, 6))
def _kl_epilogue(partials, batch, n_base, channels, same_ids, weights, mean_std):
    total = jnp.sum(partials, axis=(0, 1))                       # (n_base*C,)
    meta1_mean = total.reshape(n_base, channels) / float(batch)  # (n_base, C)
    sub_mean = jnp.mean(meta1_mean, axis=1)                      # (n_base,)
    sub_std = jnp.std(meta1_mean, axis=1, ddof=1)                # (n_base,) unbiased

    std_std, mean_sum, mean_g = [], [], []
    for line in same_ids:
        ms = jnp.stack([sub_std[k] for k in line])
        mm = jnp.stack([sub_mean[k] for k in line])
        if len(line) == 1:
            std_std.append(ms[0])
            mean_sum.append(ms[0])      # (sic) matches the PyTorch code
            mean_g.append(mm[0])
        else:
            std_std.append(jnp.std(ms, ddof=1))
            mean_sum.append(jnp.std(mm, ddof=1))
            mean_g.append(jnp.mean(mm))

    loss = jnp.float32(0.0)
    n_groups = len(same_ids)
    for i in range(n_groups):
        subloss = jnp.float32(5e-5)
        for j in range(i + 1, n_groups):
            subloss = (subloss
                       + jnp.exp((std_std[i] - std_std[j]) ** 2)
                       + mean_std * jnp.exp((mean_g[i] - mean_g[j]) ** 2))
        loss = loss + weights[i] * jnp.log(
            1.0 + mean_sum[i] / (subloss + 1.0 / (mean_sum[i] + 1e-6)))
    return loss


# ----------------------------------------------------------------------------
# Wrapper
# ----------------------------------------------------------------------------
def kl_loss(meta_list,
            base_classes=BASE_CLASSES,
            same_ids=SAME_IDS,
            weights=WEIGHTS,
            mean_std=MEAN_STD):
    n_base = len(base_classes)
    # torch.cat(meta1, 0) -> squeeze(-1,-1) -> view(batch, n_base, C); we keep
    # the data lane-dense as (batch, n_base*C) and never transpose or cast
    # eagerly (bf16 inputs stream at half the HBM bytes; cast happens in-kernel).
    chunks = [jnp.reshape(m, (m.shape[0], -1)) for m in meta_list]
    channels = chunks[0].shape[1]
    total_rows = sum(c.shape[0] for c in chunks)
    batch = total_rows // n_base
    d = n_base * channels
    dtype = chunks[0].dtype
    itemsize = jnp.dtype(dtype).itemsize

    vmem_bytes = _vmem_capacity_bytes()
    tb = _pick_batch_tile(d, itemsize, vmem_bytes)

    num_splits = max(1, min(_num_parallel_splits(), -(-batch // tb)))
    per_split = -(-batch // num_splits)
    tb = min(tb, ((per_split + 15) // 16) * 16)      # don't over-allocate tiny batches
    tiles_per_split = -(-per_split // tb)
    padded_batch = num_splits * tiles_per_split * tb

    # Zero-pad the batch up to a tile multiple.  Zeros don't change the sum and
    # the mean divides by the true `batch`; padding rides the single concat, so
    # there is no extra HBM pass (and no tb-degradation for awkward batches).
    pad_rows = (padded_batch - batch) * n_base
    if pad_rows > 0:
        chunks = chunks + [jnp.zeros((pad_rows, channels), dtype)]
    # TODO(synk): for very large inputs, feed the chunks to the kernel directly
    # (scalar-prefetched offsets + manual DMA) to avoid this concat's HBM pass.
    meta = jnp.concatenate(chunks, axis=0)           # (padded_batch*n_base, C)
    x = meta.reshape(padded_batch, d)                # lane-dense last dim

    grid = (num_splits, tiles_per_split)
    partials = pl.pallas_call(
        kl_partial_sum_kernel,
        out_shape=jax.ShapeDtypeStruct((num_splits, _SUBLANES, d), jnp.float32),
        grid=grid,
        in_specs=[pl.BlockSpec((tb, d),
                               lambda p, t: (p * tiles_per_split + t, 0))],
        out_specs=pl.BlockSpec((1, _SUBLANES, d), lambda p, t: (p, 0, 0)),
        compiler_params=pltpu.CompilerParams(
            dimension_semantics=("parallel", "arbitrary"),
            vmem_limit_bytes=int(vmem_bytes * 3 // 4)),
    )(x)

    return _kl_epilogue(
        partials, int(batch), int(n_base), int(channels),
        tuple(tuple(int(k) for k in line) for line in same_ids),
        tuple(float(w) for w in weights), float(mean_std))


# ----------------------------------------------------------------------------
# Pure-JAX reference (mirrors the PyTorch forward) for a correctness check
# ----------------------------------------------------------------------------
def kl_loss_reference(meta_list):
    meta = jnp.concatenate([jnp.reshape(m, (m.shape[0], -1)) for m in meta_list], 0)
    n_base = len(BASE_CLASSES)
    batch = meta.shape[0] // n_base
    channels = meta.shape[1]
    x = meta.reshape(batch, n_base, channels).astype(jnp.float32)
    meta1_mean = x.mean(0)                       # (n_base, C)  (== mean over batch)
    sub_mean = meta1_mean.mean(1)                # (n_base,)
    sub_std = meta1_mean.std(1, ddof=1)          # (n_base,)

    std_std, mean_sum, mean_g = [], [], []
    for line in SAME_IDS:
        ms = jnp.stack([sub_std[k] for k in line])
        mm = jnp.stack([sub_mean[k] for k in line])
        if len(line) == 1:
            std_std.append(ms[0]); mean_sum.append(ms[0]); mean_g.append(mm[0])
        else:
            std_std.append(ms.std(ddof=1))
            mean_sum.append(mm.std(ddof=1))
            mean_g.append(mm.mean())

    loss = jnp.float32(0.0)
    G = len(SAME_IDS)
    for i in range(G):
        subloss = jnp.float32(5e-5)
        for j in range(i + 1, G):
            subloss = subloss + jnp.exp((std_std[i] - std_std[j]) ** 2) \
                      + MEAN_STD * jnp.exp((mean_g[i] - mean_g[j]) ** 2)
        loss = loss + WEIGHTS[i] * jnp.log(
            1.0 + mean_sum[i] / (subloss + 1.0 / (mean_sum[i] + 1e-6)))
    return loss


# ----------------------------------------------------------------------------
if __name__ == "__main__":
    key = jax.random.PRNGKey(0)
    n_base = len(BASE_CLASSES)        # 8
    channels = 32
    # meta1 is a list of NCHW tensors with H=W=1; two chunks of (n_base, C, 1, 1)
    k1, k2 = jax.random.split(key)
    meta_list = [
        jax.random.normal(k1, (n_base, channels, 1, 1), jnp.float32),
        jax.random.normal(k2, (n_base, channels, 1, 1), jnp.float32),
    ]

    loss = jax.block_until_ready(kl_loss(meta_list))
    ref = jax.block_until_ready(kl_loss_reference(meta_list))

    assert np.isfinite(float(loss)), "kernel produced non-finite loss"
    np.testing.assert_allclose(np.asarray(loss), np.asarray(ref),
                               rtol=1e-4, atol=1e-4)
    print("KERNEL_OK")
</pallas_src>

<mosaic_0001>
module attributes {stable_mosaic.version = 11 : i64} {
  func.func @kl_partial_sum_kernel(%arg0: i32, %arg1: i32, %arg2: memref<16x256xf32, #tpu.memory_space<vmem>>, %arg3: memref<1x8x256xf32, #tpu.memory_space<vmem>>) attributes {dimension_semantics = [#tpu.dimension_semantics<parallel>, #tpu.dimension_semantics<arbitrary>], iteration_bounds = array<i64: 1, 1>, scalar_prefetch = 0 : i64, scratch_operands = 0 : i64, tpu.core_type = #tpu.core_type<tc>, window_params = [{transform_indices = @transform_0, window_bounds = array<i64: 16, 256>}, {transform_indices = @transform_1, window_bounds = array<i64: 1, 8, 256>}]} {
    %c0_i32 = arith.constant 0 : i32
    %0 = arith.cmpi eq, %arg1, %c0_i32 : i32
    %1 = arith.extui %0 : i1 to i32
    %c0_i32_0 = arith.constant 0 : i32
    %2 = arith.cmpi ne, %1, %c0_i32_0 : i32
    scf.if %2 {
      %cst_8 = arith.constant 0.000000e+00 : f32
      %10 = vector.broadcast %cst_8 : f32 to vector<1x8x256xf32>
      %c0_9 = arith.constant 0 : index
      %c0_10 = arith.constant 0 : index
      %c0_11 = arith.constant 0 : index
      %11 = vector.load %arg3[%c0_9, %c0_10, %c0_11] : memref<1x8x256xf32, #tpu.memory_space<vmem>>, vector<1x8x256xf32>
      tpu.vector_store %arg3[%c0_9, %c0_10, %c0_11], %10 {strides = array<i32>} : memref<1x8x256xf32, #tpu.memory_space<vmem>>, vector<1x8x256xf32>,
    } else {
    }
    %c0 = arith.constant 0 : index
    %c0_1 = arith.constant 0 : index
    %3 = vector.load %arg2[%c0, %c0_1] : memref<16x256xf32, #tpu.memory_space<vmem>>, vector<16x256xf32>
    %c0_2 = arith.constant 0 : index
    %c0_3 = arith.constant 0 : index
    %c0_4 = arith.constant 0 : index
    %4 = vector.load %arg3[%c0_2, %c0_3, %c0_4] : memref<1x8x256xf32, #tpu.memory_space<vmem>>, vector<1x8x256xf32>
    %5 = vector.shape_cast %3 : vector<16x256xf32> to vector<2x8x256xf32>
    %cst = arith.constant dense<0.000000e+00> : vector<8x256xf32>
    %6 = vector.multi_reduction <add>, %5, %cst [0] : vector<2x8x256xf32> to vector<8x256xf32>
    %7 = vector.shape_cast %6 : vector<8x256xf32> to vector<1x8x256xf32>
    %8 = arith.addf %4, %7 : vector<1x8x256xf32>
    %c0_5 = arith.constant 0 : index
    %c0_6 = arith.constant 0 : index
    %c0_7 = arith.constant 0 : index
    %9 = vector.load %arg3[%c0_5, %c0_6, %c0_7] : memref<1x8x256xf32, #tpu.memory_space<vmem>>, vector<1x8x256xf32>
    tpu.vector_store %arg3[%c0_5, %c0_6, %c0_7], %8 {strides = array<i32>} : memref<1x8x256xf32, #tpu.memory_space<vmem>>, vector<1x8x256xf32>,
    return
  }
  func.func @transform_0(%arg0: i32, %arg1: i32) -> (i32, i32) {
    %c1_i32 = arith.constant 1 : i32
    %0 = arith.muli %arg0, %c1_i32 : i32
    %1 = arith.addi %0, %arg1 : i32
    %c0_i32 = arith.constant 0 : i32
    %c0_i32_0 = arith.constant 0 : i32
    return %1, %c0_i32 : i32, i32
  }
  func.func @transform_1(%arg0: i32, %arg1: i32) -> (i32, i32, i32) {
    %c0_i32 = arith.constant 0 : i32
    %c0_i32_0 = arith.constant 0 : i32
    %c0_i32_1 = arith.constant 0 : i32
    return %arg0, %c0_i32, %c0_i32_0 : i32, i32, i32
  }
}

</mosaic_0001>

<bundles_post_ra>
// kernel: tpu_custom_call.1
= control target key start
LH: loop header
LB: loop body
LE: loop exit
PB: predicated region body
PF: predicated region fallthrough
CT: control target
= control target key end

     0   :  { %6 = vsyncpa [#allocation3], 0  ;;  %s154_s0 = inlined_call_operand.hbm [shape: f32[16,256], index: 0, kind: input, shape index: {}]   ;;  %s155_s1 = inlined_call_operand.hbm [shape: f32[1,8,256], index: 1, kind: output, shape index: {}]  }
   0x1   :  { %7 = vsyncpa [#allocation4], 0  ;;  %s116_s6 = smov [#allocation2]   ;;  %s68_s10 = scalar_lea.hbm %s154_s0, 512 }
   0x2   :  { %s18_s7 = sshll.u32 %s116_s6, 4  ;;  %p69_p0 = scmp.ne.s32.totalorder %s154_s0, %s68_s10  ;;  %s19_s7 = int_to_ptr.vmem [resolvable:$true] %s18_s7 }
   0x3   :  { %p72_p1 = scmp.lt.u32.totalorder %s68_s10, %s154_s0 }
   0x5   :  { %p74_p2 = pnand %p72_p1, %p69_p0 }
   0x7   :  { %77 = shalt.err (!%p74_p2)
}
   0x8   :  { %s78_s15 = scalar_lea.vmem %s19_s7, 512  ;;  %p83_p4 = scmp.lt.s32.totalorder %s19_s7, %s19_s7 }
   0x9   :  { %p79_p3 = scmp.ne.s32.totalorder %s19_s7, %s78_s15  ;;  %p84_p5 = scmp.lt.s32.totalorder %s78_s15, %s78_s15 }
   0xb   :  { %p85_p6 = por %p84_p5, %p83_p4 }
   0xd   :  { %p86_p7 = pnand %p85_p6, %p79_p3 }
   0xf   :  { %89 = shalt.err (!%p86_p7)
}
  0x10   :  { %s117_s16 = smov 256   ;;  %s118_s17 = smov 16  }
  0x11   :  { %24 = dma.hbm_to_vmem [thread:$0]  %s154_s0, 512, %s19_s7, [#allocation3], %s117_s16, %s117_s16, %s118_s17  }
  0x12   :  { %112 = dma.done.wait [#allocation3], 512  }
  0x13   :  { %113 = vsyncadd [#allocation3], 4294966784  ;;  %v36_v0 = vld [vmem:[#allocation2] sm:$0xff]  ;;  %v38_v1 = vld [vmem:[#allocation2 + $0x10] sm:$0xff]  ;;  %s119_s20 = smov [#allocation5]  }
  0x14   :  { %v37_v2 = vld [vmem:[#allocation2 + $0x8] sm:$0xff]  ;;  %v42_v3 = vadd.f32 %v38_v1, %v36_v0  ;;  %v39_v4 = vld [vmem:[#allocation2 + $0x18] sm:$0xff]  ;;  %s54_s21 = sshll.u32 %s119_s20, 4  ;;  %s55_s21 = int_to_ptr.vmem [resolvable:$true] %s54_s21 }
  0x15   :  { %v43_v5 = vadd.f32 %v39_v4, %v37_v2  ;;  %s90_s22 = scalar_lea.vmem %s55_s21, 256  ;;  %p95_p9 = scmp.lt.s32.totalorder %s55_s21, %s55_s21 }
  0x16   :  { %46 = vst [vmem:[#allocation5] sm:$0xff] %v42_v3  ;;  %p91_p8 = scmp.ne.s32.totalorder %s55_s21, %s90_s22  ;;  %p96_p10 = scmp.lt.s32.totalorder %s90_s22, %s90_s22 }
  0x17   :  { %47 = vst [vmem:[#allocation5 + $0x8] sm:$0xff] %v43_v5 }
  0x18   :  { %p97_p11 = por %p96_p10, %p95_p9 }
  0x1a   :  { %p98_p12 = pnand %p97_p11, %p91_p8 }
  0x1c   :  { %101 = shalt.err (!%p98_p12)
}
  0x1d   :  { %s102_s24 = scalar_lea.hbm %s155_s1, 256 }
  0x1e   :  { %p103_p13 = scmp.ne.s32.totalorder %s155_s1, %s102_s24  ;;  %p106_p0 = scmp.lt.u32.totalorder %s102_s24, %s155_s1 }
  0x20   :  { %p108_p1 = pnand %p106_p0, %p103_p13 }
  0x22   :  { %111 = shalt.err (!%p108_p1)
}
  0x23   :  { %57 = dma.vmem_to_hbm [thread:$0]  %s55_s21, 256, %s155_s1, [#allocation4]  }
  0x24   :  { %114 = dma.done.wait [#allocation4], 256  }
  0x25   :  { %115 = vsyncadd [#allocation4], 4294967040 }
  0x26   :  { %61 = vsyncpa [#allocation3], 1 }
  0x27   :  { %62 = vsyncpa [#allocation4], 1 }

</bundles_post_ra>
